<compile_context>
chip_gen: v7x
topology: tpu7x:2x2x1
jax: 0.10.0
libtpu: 0.0.40
codegen_flags: <defaults>
</compile_context>

<pallas_src>
import functools

import jax
import jax.numpy as jnp
from jax import lax
from jax.experimental import pallas as pl
from jax.experimental.pallas import tpu as pltpu


def _adain_kernel(x_ref, w_ref, b_ref, o_ref, *, eps):
    """One row-tile of AdaIN: per-row (instance) normalization + affine.

    x_ref: (TILE_BC, HW) input block (original dtype)
    w_ref/b_ref: (TILE_BC, 1) per-row affine params (f32)
    o_ref: (TILE_BC, HW) output block
    Each phase re-reads x_ref so only the DMA buffer stays live across
    phases; f32 temporaries have short live ranges.
    """
    n_inv = 1.0 / x_ref.shape[-1]

    # Pass 1: per-row mean (f32 accumulation).
    mean = jnp.sum(x_ref[...].astype(jnp.float32), axis=-1, keepdims=True) * n_inv

    # Pass 2: centered, biased variance — matches F.batch_norm(training=True)
    # and avoids E[x^2]-E[x]^2 cancellation for large-mean activations.
    xc = x_ref[...].astype(jnp.float32) - mean
    var = jnp.sum(xc * xc, axis=-1, keepdims=True) * n_inv
    inv_std = lax.rsqrt(var + eps)                        # EUP slot, ~free

    scale = inv_std * w_ref[...]                          # (T, 1)
    offset = b_ref[...] - mean * scale

    # Pass 3: one FMA per element, lane-dense store in the output dtype.
    o_ref[...] = (x_ref[...].astype(jnp.float32) * scale + offset).astype(o_ref.dtype)


# Per-grid-step working-set target.  ~1-4 MiB blocks already reach ~85% of the
# HBM roofline; staying <= 16 MiB keeps us under the default scoped-VMEM limit
# on v5e (and well under it on v6e/v7x) with no compiler-flag overrides.
_STEP_VMEM_BUDGET = 8 * 1024 * 1024


def _detect_num_tensorcores():
    """TensorCores per chip (v7x: 2). Conservative fallback: 1."""
    try:
        info = pltpu.get_tpu_info()
        for name in ("num_tensorcores", "tensorcore_count", "num_cores",
                     "cores_per_chip"):
            v = getattr(info, name, None)
            if v:
                return int(v)
    except Exception:
        pass
    return 1


def _choose_tile_bc(hw, itemsize, sub):
    """Row tile sized for a small per-step working set (many grid steps)."""
    # Per row per step: double-buffered input + output blocks, ~2 f32
    # block-sized temporaries in the body, plus the lane-padded (tile, 1) f32
    # weight/bias blocks (2 arrays x 2 buffers x 128 lanes x 4 B).
    bytes_per_row = hw * (2 * itemsize + 2 * itemsize + 2 * 4) + 2 * 2 * 128 * 4
    tile = (_STEP_VMEM_BUDGET // bytes_per_row) // sub * sub
    return max(sub, tile)


def adaptive_instance_norm_2d(x, weight, bias, *, eps=1e-5, tile_bc=None):
    """x: (B, C, H, W); weight/bias: (B*C,) externally-assigned AdaIN params."""
    B, C, H, W = x.shape
    BC = B * C
    HW = H * W
    assert weight.shape == (BC,) and bias.shape == (BC,)

    itemsize = jnp.dtype(x.dtype).itemsize
    sub = 16 if itemsize == 2 else 8          # sublane alignment per dtype

    if tile_bc is None:
        tile_bc = _choose_tile_bc(HW, itemsize, sub)
    else:
        tile_bc = max(sub, (tile_bc // sub) * sub)

    if tile_bc >= BC:
        # Single full row block (full-dim blocks are exempt from the
        # 8-sublane divisibility rule).
        tile_bc = BC
        steps = 1
    else:
        steps = -(-BC // tile_bc)
        # v7x megacore: balance the 2 TensorCores when the grid is short by
        # nudging the step count to a core multiple.  No effect on single-TC
        # v5e/v6e (detection falls back to 1 core -> no tile shrink).
        num_cores = _detect_num_tensorcores()
        if num_cores > 1 and 1 < steps < 16 and steps % num_cores:
            target_steps = -(-steps // num_cores) * num_cores
            rows_per_step = -(-BC // target_steps)
            new_tile = -(-rows_per_step // sub) * sub
            if sub <= new_tile < tile_bc:
                tile_bc = new_tile
                steps = -(-BC // tile_bc)

    # TODO(synk): for spatial sizes where even `sub` rows of HW exceed the
    # per-step budget (e.g. 1024x1024 f32 on v7x's 64 MiB VMEM), add a second
    # "arbitrary" grid axis over HW with chunked stats accumulation + apply.
    # TODO(synk): for HW not a multiple of 128 (odd spatial sizes), pad the
    # lane axis and mask the stats to keep stores lane-dense; FUNIT's
    # power-of-two feature maps do not need it.

    x2 = x.reshape(BC, HW)                               # free view, no HBM copy
    w2 = weight.astype(jnp.float32).reshape(BC, 1)
    b2 = bias.astype(jnp.float32).reshape(BC, 1)

    out2 = pl.pallas_call(
        functools.partial(_adain_kernel, eps=eps),
        out_shape=jax.ShapeDtypeStruct((BC, HW), x.dtype),
        grid_spec=pltpu.PrefetchScalarGridSpec(
            num_scalar_prefetch=0,
            grid=(steps,),
            in_specs=[
                pl.BlockSpec((tile_bc, HW), lambda i: (i, 0)),
                pl.BlockSpec((tile_bc, 1), lambda i: (i, 0)),
                pl.BlockSpec((tile_bc, 1), lambda i: (i, 0)),
            ],
            out_specs=pl.BlockSpec((tile_bc, HW), lambda i: (i, 0)),
        ),
        compiler_params=pltpu.CompilerParams(
            dimension_semantics=("parallel",)),
    )(x2, w2, b2)

    return out2.reshape(B, C, H, W)


def _reference(x, weight, bias, eps=1e-5):
    B, C, H, W = x.shape
    x2 = x.reshape(B * C, H * W).astype(jnp.float32)
    mean = jnp.mean(x2, axis=-1, keepdims=True)
    var = jnp.mean((x2 - mean) ** 2, axis=-1, keepdims=True)
    y = (x2 - mean) / jnp.sqrt(var + eps)
    y = y * weight[:, None] + bias[:, None]
    return y.reshape(B, C, H, W).astype(x.dtype)


if __name__ == "__main__":
    B, C, H, W = 2, 4, 16, 16
    key = jax.random.PRNGKey(0)
    kx, kw, kb = jax.random.split(key, 3)

    x = jax.random.normal(kx, (B, C, H, W), dtype=jnp.float32)
    # AdaIN weight/bias are assigned externally in FUNIT (shape = B*C).
    weight = 1.0 + 0.1 * jax.random.normal(kw, (B * C,), dtype=jnp.float32)
    bias = 0.1 * jax.random.normal(kb, (B * C,), dtype=jnp.float32)

    out = adaptive_instance_norm_2d(x, weight, bias, eps=1e-5)
    out = jax.block_until_ready(out)

    ref = _reference(x, weight, bias, eps=1e-5)
    assert out.shape == (B, C, H, W)
    assert jnp.allclose(out, ref, atol=1e-4, rtol=1e-4)

    print("KERNEL_OK")
</pallas_src>

<mosaic_0001>
module attributes {stable_mosaic.version = 11 : i64} {
  func.func @_adain_kernel(%arg0: i32, %arg1: memref<8x256xf32, #tpu.memory_space<vmem>>, %arg2: memref<8x1xf32, #tpu.memory_space<vmem>>, %arg3: memref<8x1xf32, #tpu.memory_space<vmem>>, %arg4: memref<8x256xf32, #tpu.memory_space<vmem>>) attributes {dimension_semantics = [#tpu.dimension_semantics<parallel>], iteration_bounds = array<i64: 1>, scalar_prefetch = 0 : i64, scratch_operands = 0 : i64, tpu.core_type = #tpu.core_type<tc>, window_params = [{transform_indices = @transform_0, window_bounds = array<i64: 8, 256>}, {transform_indices = @transform_1, window_bounds = array<i64: 8, 1>}, {transform_indices = @transform_2, window_bounds = array<i64: 8, 1>}, {transform_indices = @transform_3, window_bounds = array<i64: 8, 256>}]} {
    %c0 = arith.constant 0 : index
    %c0_0 = arith.constant 0 : index
    %0 = vector.load %arg1[%c0, %c0_0] : memref<8x256xf32, #tpu.memory_space<vmem>>, vector<8x256xf32>
    %cst = arith.constant dense<0.000000e+00> : vector<8xf32>
    %1 = vector.multi_reduction <add>, %0, %cst [1] : vector<8x256xf32> to vector<8xf32>
    %2 = vector.shape_cast %1 : vector<8xf32> to vector<8x1xf32>
    %cst_1 = arith.constant 3.906250e-03 : f32
    %3 = vector.broadcast %cst_1 : f32 to vector<8x1xf32>
    %4 = arith.mulf %2, %3 : vector<8x1xf32>
    %c0_2 = arith.constant 0 : index
    %c0_3 = arith.constant 0 : index
    %5 = vector.load %arg1[%c0_2, %c0_3] : memref<8x256xf32, #tpu.memory_space<vmem>>, vector<8x256xf32>
    %6 = vector.broadcast %4 : vector<8x1xf32> to vector<8x256xf32>
    %7 = arith.subf %5, %6 : vector<8x256xf32>
    %8 = arith.mulf %7, %7 : vector<8x256xf32>
    %cst_4 = arith.constant dense<0.000000e+00> : vector<8xf32>
    %9 = vector.multi_reduction <add>, %8, %cst_4 [1] : vector<8x256xf32> to vector<8xf32>
    %10 = vector.shape_cast %9 : vector<8xf32> to vector<8x1xf32>
    %cst_5 = arith.constant 3.906250e-03 : f32
    %11 = vector.broadcast %cst_5 : f32 to vector<8x1xf32>
    %12 = arith.mulf %10, %11 : vector<8x1xf32>
    %cst_6 = arith.constant 9.99999974E-6 : f32
    %13 = vector.broadcast %cst_6 : f32 to vector<8x1xf32>
    %14 = arith.addf %12, %13 : vector<8x1xf32>
    %15 = math.rsqrt %14 : vector<8x1xf32>
    %c0_7 = arith.constant 0 : index
    %c0_8 = arith.constant 0 : index
    %16 = vector.load %arg2[%c0_7, %c0_8] : memref<8x1xf32, #tpu.memory_space<vmem>>, vector<8x1xf32>
    %17 = arith.mulf %15, %16 : vector<8x1xf32>
    %c0_9 = arith.constant 0 : index
    %c0_10 = arith.constant 0 : index
    %18 = vector.load %arg3[%c0_9, %c0_10] : memref<8x1xf32, #tpu.memory_space<vmem>>, vector<8x1xf32>
    %19 = arith.mulf %4, %17 : vector<8x1xf32>
    %20 = arith.subf %18, %19 : vector<8x1xf32>
    %c0_11 = arith.constant 0 : index
    %c0_12 = arith.constant 0 : index
    %21 = vector.load %arg1[%c0_11, %c0_12] : memref<8x256xf32, #tpu.memory_space<vmem>>, vector<8x256xf32>
    %22 = vector.broadcast %17 : vector<8x1xf32> to vector<8x256xf32>
    %23 = arith.mulf %21, %22 : vector<8x256xf32>
    %24 = vector.broadcast %20 : vector<8x1xf32> to vector<8x256xf32>
    %25 = arith.addf %23, %24 : vector<8x256xf32>
    %c0_13 = arith.constant 0 : index
    %c0_14 = arith.constant 0 : index
    %26 = vector.load %arg4[%c0_13, %c0_14] : memref<8x256xf32, #tpu.memory_space<vmem>>, vector<8x256xf32>
    tpu.vector_store %arg4[%c0_13, %c0_14], %25 {strides = array<i32>} : memref<8x256xf32, #tpu.memory_space<vmem>>, vector<8x256xf32>,
    return
  }
  func.func @transform_0(%arg0: i32) -> (i32, i32) {
    %c0_i32 = arith.constant 0 : i32
    %c0_i32_0 = arith.constant 0 : i32
    return %arg0, %c0_i32 : i32, i32
  }
  func.func @transform_1(%arg0: i32) -> (i32, i32) {
    %c0_i32 = arith.constant 0 : i32
    %c0_i32_0 = arith.constant 0 : i32
    return %arg0, %c0_i32 : i32, i32
  }
  func.func @transform_2(%arg0: i32) -> (i32, i32) {
    %c0_i32 = arith.constant 0 : i32
    %c0_i32_0 = arith.constant 0 : i32
    return %arg0, %c0_i32 : i32, i32
  }
  func.func @transform_3(%arg0: i32) -> (i32, i32) {
    %c0_i32 = arith.constant 0 : i32
    %c0_i32_0 = arith.constant 0 : i32
    return %arg0, %c0_i32 : i32, i32
  }
}

</mosaic_0001>

<bundles_post_ra>
// kernel: tpu_custom_call.1
= control target key start
LH: loop header
LB: loop body
LE: loop exit
PB: predicated region body
PF: predicated region fallthrough
CT: control target
= control target key end

     0   :  { %s142_s0 = inlined_call_operand.vmem [shape: f32[8,256], index: 0, kind: input, shape index: {}]   ;;  %s143_s1 = inlined_call_operand.vmem [shape: f32[8,1], index: 1, kind: input, shape index: {}]   ;;  %s144_s2 = inlined_call_operand.vmem [shape: f32[8,1], index: 2, kind: input, shape index: {}]   ;;  %s145_s3 = inlined_call_operand.hbm [shape: f32[8,256], index: 3, kind: output, shape index: {}]  }
   0x1   :  { %v15_v0 = vld [vmem:[%s142_s0] sm:$0xff]  ;;  %v16_v1 = vld [vmem:[%s142_s0 + $0x8] sm:$0xff] }
   0x2   :  { %8 = vsyncpa [#allocation3], 0  ;;  %v17_v2 = vadd.f32 %v16_v1, %v15_v0  ;;  %v96_v10 = vmov 0   ;;  %v31_v14 = vld [vmem:[%s143_s1] sm:$0xff]  ;;  %s97_s19 = smov [#allocation2]  }
   0x3   :  { %68 = vset.pattern.permute.xlu1 %v96_v10  ;;  %69 = vset.pattern.permute.xlu0 %v96_v10  ;;  %v33_v17 = vld [vmem:[%s144_s2] sm:$0xff]  ;;  %s58_s20 = sshll.u32 %s97_s19, 4  ;;  %s59_s20 = int_to_ptr.vmem [resolvable:$true] %s58_s20 }
   0x4   :  { %18 = vadd.xlane.f32.xlu0 %v17_v2  ;;  %s72_s1 = scalar_lea.vmem %s59_s20, 256  ;;  %p77_p1 = scmp.lt.s32.totalorder %s59_s20, %s59_s20 }
   0x5   :  { %p73_p0 = scmp.ne.s32.totalorder %s59_s20, %s72_s1  ;;  %p78_p2 = scmp.lt.s32.totalorder %s72_s1, %s72_s1 }
   0x7   :  { %p79_p3 = por %p78_p2, %p77_p1 }
   0x9   :  { %p80_p4 = pnand %p79_p3, %p73_p0 }
  0x91   :  { %v19_v3 = vpop.xlane.xlu0 %18 }
  0x92   :  { %v20_v4 = vmul.f32 0.00390625, %v19_v3 }
  0x94   :  { %v21_v5 = vsub.f32 %v15_v0, %v20_v4  ;;  %v22_v6 = vsub.f32 %v16_v1, %v20_v4 }
  0x96   :  { %v23_v7 = vmul.f32 %v21_v5, %v21_v5  ;;  %v24_v8 = vmul.f32 %v22_v6, %v22_v6 }
  0x98   :  { %v25_v9 = vadd.f32 %v24_v8, %v23_v7 }
  0x9a   :  { %26 = vadd.xlane.f32.xlu0 %v25_v9 }
 0x127   :  { %v27_v11 = vpop.xlane.xlu0 %26 }
 0x128   :  { %v28_v12 = vmul.f32 0.00390625, %v27_v11 }
 0x12a   :  { %v29_v13 = vadd.f32 1e-05, %v28_v12 }
 0x12c   :  { %70 = vrsqrt.f32 %v29_v13 }
 0x136   :  { %v71_v15 = vpop.eup %70 }
 0x137   :  { %v32_v16 = vmul.f32 %v71_v15, %v31_v14 }
 0x139   :  { %38 = vperm.xlu1 %68, %v32_v16   ;;  %v34_v18 = vmul.f32 %v32_v16, %v20_v4 }
 0x13b   :  { %v35_v19 = vsub.f32 %v33_v17, %v34_v18 }
 0x13d   :  { %45 = vperm.xlu1 %68, %v35_v19  }
 0x1b8   :  { %v39_v20 = vpop.permute.xlu1 %38 }
 0x1b9   :  { %v41_v21 = vmul.f32 %v39_v20, %v15_v0  ;;  %v42_v22 = vmul.f32 %v39_v20, %v16_v1 }
 0x1bc   :  { %v46_v23 = vpop.permute.xlu1 %45 }
 0x1bd   :  { %v48_v24 = vadd.f32 %v46_v23, %v41_v21  ;;  %v49_v25 = vadd.f32 %v46_v23, %v42_v22 }
 0x1bf   :  { %50 = vst [vmem:[#allocation2] sm:$0xff] %v48_v24  ;;  %51 = vst [vmem:[#allocation2 + $0x8] sm:$0xff] %v49_v25 }
 0x1c0   :  { %83 = shalt.err (!%p80_p4)
}
 0x1c1   :  { %s84_s22 = scalar_lea.hbm %s145_s3, 256 }
 0x1c2   :  { %p85_p5 = scmp.ne.s32.totalorder %s145_s3, %s84_s22  ;;  %p88_p6 = scmp.lt.u32.totalorder %s84_s22, %s145_s3 }
 0x1c4   :  { %p90_p7 = pnand %p88_p6, %p85_p5 }
 0x1c6   :  { %93 = shalt.err (!%p90_p7)
}
 0x1c7   :  { %61 = dma.vmem_to_hbm [thread:$0]  %s59_s20, 256, %s145_s3, [#allocation3]  }
 0x1c8   :  { %94 = dma.done.wait [#allocation3], 256  }
 0x1c9   :  { %95 = vsyncadd [#allocation3], 4294967040 }
 0x1ca   :  { %65 = vsyncpa [#allocation3], 1 }

</bundles_post_ra>
